<compile_context>
chip_gen: v6e
topology: v6e:2x2x1
jax: 0.10.0
libtpu: 0.0.40
codegen_flags: <defaults>
</compile_context>

<pallas_src>
import functools
import math

import jax
import jax.numpy as jnp
from jax.experimental import pallas as pl
from jax.experimental.pallas import tpu as pltpu


# ---------------------------------------------------------------------------
# helpers
# ---------------------------------------------------------------------------

def _round_up(x, m):
    return (x + m - 1) // m * m


def _pick_tile(c, prefs=(256, 128)):
    """Largest preferred channel tile dividing c, else the full extent."""
    for p in prefs:
        if c % p == 0:
            return p
    return c


def _cin_slices(cin, cout_t):
    """Static (start, size) Cin sub-slices keeping per-dot operands <= ~64 KiB."""
    max_cs = max(32768 // max(cout_t, 1), 128)
    for cs in (256, 128):
        if cs <= max_cs and cin % cs == 0:
            return tuple((i * cs, cs) for i in range(cin // cs))
    return ((0, cin),)


def _halo_block(tt, halo):
    """Smallest multiple of 8 >= halo that divides the time tile (tt works)."""
    hb = 8
    while hb < tt:
        if hb >= halo and tt % hb == 0:
            return hb
        hb += 8
    return tt


def _vmem_limit_bytes():
    """Generation-aware VMEM limit: 3/4 of capacity, capped at 96 MiB."""
    try:
        cap = int(pltpu.get_tpu_info().vmem_capacity_bytes)
    except Exception:
        cap = 128 * 1024 * 1024
    return min(cap * 3 // 4, 96 * 1024 * 1024)


# ---------------------------------------------------------------------------
# Pallas kernels
# ---------------------------------------------------------------------------

def _conv_bn_body(x_ref, xh_ref, w_ref, scale_ref, shift_ref,
                  xres_ref, wres_ref, rscale_ref, rshift_ref,
                  out_ref, win_ref, *,
                  K, dilation, halo_b, cin_slices, res_slices, apply_act):
    """Conv1d (stride=1) + folded BN (+ fused 1x1 residual(s) + Hardtanh).

    x_ref:     (1, tt, Cin)        current time tile
    xh_ref:    (1, halo_b, Cin)    leading rows of the next time tile (halo)
    w_ref:     (K, Cin, Cout_t)
    scale_ref: (1, Cout_t)   gamma / sqrt(var + eps)
    shift_ref: (1, Cout_t)   beta - mean * scale
    xres_ref:  (1, tt, Cres)       fused residual pane(s) (optional)
    wres_ref:  (Cres, Cout_t)      1x1 residual conv weight (optional)
    out_ref:   (1, tt, Cout_t)
    win_ref:   (tt + halo_b, Cin)  VMEM scratch for the haloed window
    """
    tt, cout_t = out_ref.shape[1], out_ref.shape[2]

    # Stitch the haloed time window into VMEM scratch so every tap is a plain
    # shifted slice of one contiguous buffer (no value-level relayouts).
    win_ref[pl.ds(0, tt), :] = x_ref[0]
    win_ref[pl.ds(tt, halo_b), :] = xh_ref[0]

    # K-tap conv as MXU matmuls, f32 register accumulation (acc <= 128 KiB).
    # TODO(synk): on v7x this chain could target the MXU result buffer directly
    # (matmul_push_rhs / matmul_acc_lhs / matmul_pop) to drop the VPU adds.
    acc = jnp.zeros((tt, cout_t), jnp.float32)
    for k in range(K):
        r0 = k * dilation
        for (c0, cs) in cin_slices:
            acc = acc + jnp.dot(win_ref[pl.ds(r0, tt), pl.ds(c0, cs)],
                                w_ref[k, pl.ds(c0, cs), :],
                                preferred_element_type=jnp.float32)

    # Folded BatchNorm (loads/broadcasts hoisted: done exactly once per tile).
    y = acc * scale_ref[...] + shift_ref[...]

    if xres_ref is not None:
        r = jnp.zeros((tt, cout_t), jnp.float32)
        for (c0, cs) in res_slices:
            r = r + jnp.dot(xres_ref[0, :, pl.ds(c0, cs)],
                            wres_ref[pl.ds(c0, cs), :],
                            preferred_element_type=jnp.float32)
        y = y + (r * rscale_ref[...] + rshift_ref[...])

    if apply_act:
        y = jnp.clip(y, 0.0, 20.0)   # Hardtanh(min=0, max=20); Dropout = identity
    out_ref[0] = y.astype(out_ref.dtype)


def _conv_bn_kernel(x_ref, xh_ref, w_ref, scale_ref, shift_ref, out_ref, win_ref,
                    *, K, dilation, halo_b, cin_slices, res_slices, apply_act):
    del res_slices
    _conv_bn_body(x_ref, xh_ref, w_ref, scale_ref, shift_ref,
                  None, None, None, None, out_ref, win_ref,
                  K=K, dilation=dilation, halo_b=halo_b,
                  cin_slices=cin_slices, res_slices=(), apply_act=apply_act)


def _conv_bn_res_kernel(x_ref, xh_ref, w_ref, scale_ref, shift_ref,
                        xres_ref, wres_ref, rscale_ref, rshift_ref,
                        out_ref, win_ref,
                        *, K, dilation, halo_b, cin_slices, res_slices, apply_act):
    _conv_bn_body(x_ref, xh_ref, w_ref, scale_ref, shift_ref,
                  xres_ref, wres_ref, rscale_ref, rshift_ref, out_ref, win_ref,
                  K=K, dilation=dilation, halo_b=halo_b,
                  cin_slices=cin_slices, res_slices=res_slices,
                  apply_act=apply_act)


# ---------------------------------------------------------------------------
# pallas_call wrapper
# ---------------------------------------------------------------------------

def conv1d_bn_act(x_btc, w_kio, scale, shift, *, dilation, padding, apply_act,
                  residual=None, t_tile=128, out_dtype=jnp.bfloat16):
    """x_btc: (B, T, Cin) bf16; w_kio: (K, Cin, Cout) bf16; scale/shift: (Cout,) f32.

    residual (optional): (xres_btc, w_io, res_scale, res_shift) -- 1x1 residual
    conv(s) + BN fused before the final Hardtanh.
    """
    B, T, Cin = x_btc.shape
    K, _, Cout = w_kio.shape
    halo = dilation * (K - 1)
    T_out = T + 2 * padding - halo

    # Time tile: multiple of 8, >= halo (one halo block suffices).  Production
    # configs should keep t_tile >= 128 so the MXU stays fed and stores unmasked.
    tt = min(_round_up(t_tile, 8), _round_up(max(T_out, 8), 8))
    tt = max(tt, _round_up(halo, 8))
    halo_b = _halo_block(tt, halo)
    n_t = pl.cdiv(T_out, tt)
    T_out_p = n_t * tt

    cout_t = _pick_tile(Cout)
    n_co = Cout // cout_t
    cin_slices = _cin_slices(Cin, cout_t)

    # Pad time: left 'same' halo + right up to T_out_p + halo_b rows total.
    # TODO(synk): fold the halo padding into the kernel via masked edge tiles to
    # save one padded activation copy in HBM per layer.
    L = T_out_p + halo_b
    x_pad = jnp.pad(x_btc, ((0, 0), (padding, L - padding - T), (0, 0)))

    ratio = tt // halo_b
    in_specs = [
        pl.BlockSpec((1, tt, Cin), lambda co, b, t: (b, t, 0)),
        pl.BlockSpec((1, halo_b, Cin), lambda co, b, t: (b, (t + 1) * ratio, 0)),
        pl.BlockSpec((K, Cin, cout_t), lambda co, b, t: (0, 0, co)),
        pl.BlockSpec((1, cout_t), lambda co, b, t: (0, co)),
        pl.BlockSpec((1, cout_t), lambda co, b, t: (0, co)),
    ]
    args = [x_pad, x_pad, w_kio, scale.reshape(1, Cout), shift.reshape(1, Cout)]

    flops = 2 * B * T_out_p * Cin * Cout * K
    bytes_accessed = (x_pad.size * x_pad.dtype.itemsize
                      + w_kio.size * w_kio.dtype.itemsize
                      + B * T_out_p * Cout * jnp.dtype(out_dtype).itemsize)

    res_slices = ()
    if residual is not None:
        xres, wres, rscale, rshift = residual
        assert xres.shape[0] == B and xres.shape[1] == T_out, (
            "residual pane time length must match the conv output length "
            "(odd kernel size, stride 1)")
        c_res = xres.shape[2]
        xres_p = jnp.pad(xres, ((0, 0), (0, T_out_p - T_out), (0, 0)))
        res_slices = _cin_slices(c_res, cout_t)
        in_specs += [
            pl.BlockSpec((1, tt, c_res), lambda co, b, t: (b, t, 0)),
            pl.BlockSpec((c_res, cout_t), lambda co, b, t: (0, co)),
            pl.BlockSpec((1, cout_t), lambda co, b, t: (0, co)),
            pl.BlockSpec((1, cout_t), lambda co, b, t: (0, co)),
        ]
        args += [xres_p, wres, rscale.reshape(1, Cout), rshift.reshape(1, Cout)]
        kern_fn = _conv_bn_res_kernel
        flops += 2 * B * T_out_p * c_res * Cout
        bytes_accessed += (xres_p.size * xres_p.dtype.itemsize
                           + wres.size * wres.dtype.itemsize)
    else:
        kern_fn = _conv_bn_kernel

    kern = functools.partial(kern_fn, K=K, dilation=dilation, halo_b=halo_b,
                             cin_slices=cin_slices, res_slices=res_slices,
                             apply_act=apply_act)

    out = pl.pallas_call(
        kern,
        out_shape=jax.ShapeDtypeStruct((B, T_out_p, Cout), out_dtype),
        grid=(n_co, B, n_t),
        in_specs=in_specs,
        out_specs=pl.BlockSpec((1, tt, cout_t), lambda co, b, t: (b, t, co)),
        scratch_shapes=[pltpu.VMEM((tt + halo_b, Cin), x_btc.dtype)],
        compiler_params=pltpu.CompilerParams(
            dimension_semantics=("parallel", "parallel", "parallel"),
            vmem_limit_bytes=_vmem_limit_bytes()),
        cost_estimate=pl.CostEstimate(flops=int(flops), transcendentals=0,
                                      bytes_accessed=int(bytes_accessed)),
    )(*args)
    return out[:, :T_out, :]


# ---------------------------------------------------------------------------
# JasperBlock in JAX (plain-array parameters, forward via Pallas)
# ---------------------------------------------------------------------------

def _fold_bn(gamma, beta, mean, var, eps=1e-3):   # BatchNorm1d(planes, eps=0.001)
    scale = gamma / jnp.sqrt(var + eps)
    shift = beta - mean * scale
    return scale, shift


def _init_conv_bn(key, cin, cout, k):
    """Xavier-normal conv weight (torch shape (cout, cin, k)) + BN params.

    Returns kernel layout: w (k, cin, cout) bf16, folded scale/shift (cout,) f32.
    """
    kw, kg, kb, km, kv = jax.random.split(key, 5)
    std = math.sqrt(2.0 / (cin * k + cout * k))
    w = jax.random.normal(kw, (k, cin, cout), jnp.float32) * std
    gamma = jax.random.uniform(kg, (cout,), jnp.float32, 0.5, 1.5)
    beta = 0.1 * jax.random.normal(kb, (cout,), jnp.float32)
    mean = 0.1 * jax.random.normal(km, (cout,), jnp.float32)
    var = jax.random.uniform(kv, (cout,), jnp.float32, 0.5, 1.5)
    scale, shift = _fold_bn(gamma, beta, mean, var)
    return w.astype(jnp.bfloat16), scale, shift


class JasperBlockPallas:
    def __init__(self, key, inplanes, planes, repeat=3, kernel_size=(11,),
                 stride=(1,), dilation=(1,), dropout=0.2, residual=True,
                 residual_panes=(), t_tile=128):
        if stride[0] > 1 and dilation[0] > 1:
            raise ValueError("Only stride OR dilation may be greater than 1")
        if stride[0] != 1:
            # TODO(synk): strided conv path not implemented; Jasper uses stride=1.
            raise NotImplementedError("stride > 1 not supported")
        if dilation[0] > 1:
            self.padding = dilation[0] * kernel_size[0] // 2 - 1
        else:
            self.padding = kernel_size[0] // 2
        self.dilation = dilation[0]
        self.dropout = dropout           # identity at inference
        self.t_tile = t_tile

        keys = jax.random.split(key, repeat + 16)
        self.conv_layers = []
        cin = inplanes
        for r in range(repeat):
            self.conv_layers.append(
                _init_conv_bn(keys[r], cin, planes, kernel_size[0]))
            cin = planes

        res_panes = list(residual_panes)
        self.dense_residual = residual
        self.res_layers = None
        if residual:
            if len(res_panes) == 0:
                res_panes = [inplanes]
                self.dense_residual = False
            self.res_layers = []
            for i, ip in enumerate(res_panes):
                w, s, sh = _init_conv_bn(keys[repeat + i], ip, planes, 1)
                self.res_layers.append((w[0], s, sh))   # (Cin, Cout) 1x1 weight

    def _fused_residual(self, xs):
        """Fuse all residual panes into one (sum Ci, Cout) 1x1 matmul."""
        panes = [jnp.transpose(xs[i], (0, 2, 1)).astype(jnp.bfloat16)
                 for i in range(len(self.res_layers))]
        if len(self.res_layers) == 1:
            w, s, sh = self.res_layers[0]
            return panes[0], w, s, sh
        # Fold each pane's BN scale into its weight columns so one concatenated
        # matmul sums the panes correctly; shifts just add up.
        xres = jnp.concatenate(panes, axis=-1)
        w_cat = jnp.concatenate(
            [(w.astype(jnp.float32) * s[None, :]).astype(jnp.bfloat16)
             for (w, s, _) in self.res_layers], axis=0)
        cout = self.res_layers[0][0].shape[1]
        rscale = jnp.ones((cout,), jnp.float32)
        rshift = sum(sh for (_, _, sh) in self.res_layers)
        return xres, w_cat, rscale, rshift

    def forward(self, xs):
        """xs: list of (B, C, T) arrays (PyTorch NCT layout). Returns a list."""
        out = jnp.transpose(xs[-1], (0, 2, 1)).astype(jnp.bfloat16)   # (B, T, C)
        n = len(self.conv_layers)
        for i, (w, scale, shift) in enumerate(self.conv_layers):
            last = i == n - 1
            if last and self.res_layers is not None:
                out = conv1d_bn_act(out, w, scale, shift,
                                    dilation=self.dilation, padding=self.padding,
                                    apply_act=True,
                                    residual=self._fused_residual(xs),
                                    t_tile=self.t_tile)
            else:
                # Final conv of self.conv has no activation before the residual
                # add; without residual, self.out's activation applies at once.
                apply_act = (not last) or (self.res_layers is None)
                out = conv1d_bn_act(out, w, scale, shift,
                                    dilation=self.dilation, padding=self.padding,
                                    apply_act=apply_act, t_tile=self.t_tile)
        out_nct = jnp.transpose(out, (0, 2, 1)).astype(jnp.float32)   # (B, C, T)
        if self.res_layers is not None and self.dense_residual:
            return list(xs) + [out_nct]
        return [out_nct]


# ---------------------------------------------------------------------------
# Plain-JAX reference (verification only; mirrors the bf16 storage points)
# ---------------------------------------------------------------------------

def _q(a):                      # emulate bf16 activation storage
    return a.astype(jnp.bfloat16).astype(jnp.float32)


def _ref_conv_bn(x_nct, w_kio, scale, shift, dil, pad):
    w_oik = jnp.transpose(w_kio.astype(jnp.float32), (2, 1, 0))     # (Cout,Cin,K)
    y = jax.lax.conv_general_dilated(
        x_nct, w_oik, window_strides=(1,), padding=[(pad, pad)],
        rhs_dilation=(dil,), dimension_numbers=("NCH", "OIH", "NCH"))
    return y * scale[None, :, None] + shift[None, :, None]


def reference_forward(block, xs):
    out = _q(xs[-1])
    n = len(block.conv_layers)
    for i, (w, s, sh) in enumerate(block.conv_layers):
        last = i == n - 1
        y = _ref_conv_bn(out, w, s, sh, block.dilation, block.padding)
        if last and block.res_layers is not None:
            for j, (wr, sr, shr) in enumerate(block.res_layers):
                y = y + _ref_conv_bn(_q(xs[j]), wr[None], sr, shr, 1, 0)
            y = jnp.clip(y, 0.0, 20.0)
        elif (not last) or (block.res_layers is None):
            y = jnp.clip(y, 0.0, 20.0)
        out = _q(y)
    if block.res_layers is not None and block.dense_residual:
        return list(xs) + [out]
    return [out]


def _check(outs, refs, rtol=2e-2, atol=2e-2):
    assert len(outs) == len(refs), (len(outs), len(refs))
    for o, r in zip(outs, refs):
        o = jax.block_until_ready(o)
        assert o.shape == r.shape, (o.shape, r.shape)
        if not jnp.allclose(o, r, rtol=rtol, atol=atol):
            err = float(jnp.max(jnp.abs(o - r)))
            raise AssertionError(f"Pallas output mismatch (max abs err {err})")


# ---------------------------------------------------------------------------

if __name__ == "__main__":
    key = jax.random.PRNGKey(0)
    k1, k2, k3, kx1, kx2, kx3, kx4 = jax.random.split(key, 7)

    # Test A: default Jasper block (single residual pane fused into final conv).
    block_a = JasperBlockPallas(k1, inplanes=16, planes=32, repeat=3,
                                kernel_size=(11,), residual=True)
    xa = jax.random.normal(kx1, (2, 16, 64), jnp.float32)     # (B, C, T) NCT
    outs_a = block_a.forward([xa])
    _check(outs_a, reference_forward(block_a, [xa]))

    # Test B: dense residual (two panes fused via channel concat), multiple time
    # tiles (t_tile=32) and multiple Cout tiles (384 -> 3 x 128).
    block_b = JasperBlockPallas(k2, inplanes=384, planes=384, repeat=2,
                                kernel_size=(5,), residual=True,
                                residual_panes=[128, 384], t_tile=32)
    xb0 = jax.random.normal(kx2, (1, 128, 48), jnp.float32)
    xb1 = jax.random.normal(kx3, (1, 384, 48), jnp.float32)
    outs_b = block_b.forward([xb0, xb1])
    _check(outs_b, reference_forward(block_b, [xb0, xb1]))

    # Test C: dilation=2, no residual; exercises halo block == time tile path.
    block_c = JasperBlockPallas(k3, inplanes=16, planes=32, repeat=2,
                                kernel_size=(11,), dilation=(2,), residual=False,
                                t_tile=32)
    xc = jax.random.normal(kx4, (2, 16, 64), jnp.float32)
    outs_c = block_c.forward([xc])
    _check(outs_c, reference_forward(block_c, [xc]))

    print("KERNEL_OK")
</pallas_src>

<mosaic_0001>
module attributes {stable_mosaic.version = 11 : i64} {
  func.func @_conv_bn_kernel(%arg0: i32, %arg1: i32, %arg2: i32, %arg3: memref<1x64x16xbf16, #tpu.memory_space<vmem>>, %arg4: memref<1x16x16xbf16, #tpu.memory_space<vmem>>, %arg5: memref<11x16x32xbf16, #tpu.memory_space<vmem>>, %arg6: memref<1x32xf32, #tpu.memory_space<vmem>>, %arg7: memref<1x32xf32, #tpu.memory_space<vmem>>, %arg8: memref<1x64x32xbf16, #tpu.memory_space<vmem>>, %arg9: memref<80x16xbf16, #tpu.memory_space<vmem>>) attributes {dimension_semantics = [#tpu.dimension_semantics<parallel>, #tpu.dimension_semantics<parallel>, #tpu.dimension_semantics<parallel>], iteration_bounds = array<i64: 1, 2, 1>, scalar_prefetch = 0 : i64, scratch_operands = 1 : i64, tpu.core_type = #tpu.core_type<tc>, window_params = [{transform_indices = @transform_0, window_bounds = array<i64: 1, 64, 16>}, {transform_indices = @transform_1, window_bounds = array<i64: 1, 16, 16>}, {transform_indices = @transform_2, window_bounds = array<i64: 11, 16, 32>}, {transform_indices = @transform_3, window_bounds = array<i64: 1, 32>}, {transform_indices = @transform_4, window_bounds = array<i64: 1, 32>}, {transform_indices = @transform_5, window_bounds = array<i64: 1, 64, 32>}]} {
    %c0 = arith.constant 0 : index
    %c0_0 = arith.constant 0 : index
    %c0_1 = arith.constant 0 : index
    %0 = vector.load %arg3[%c0, %c0_0, %c0_1] : memref<1x64x16xbf16, #tpu.memory_space<vmem>>, vector<1x64x16xbf16>
    %1 = vector.shape_cast %0 : vector<1x64x16xbf16> to vector<64x16xbf16>
    %c0_2 = arith.constant 0 : index
    %c0_3 = arith.constant 0 : index
    %2 = vector.load %arg9[%c0_2, %c0_3] : memref<80x16xbf16, #tpu.memory_space<vmem>>, vector<64x16xbf16>
    tpu.vector_store %arg9[%c0_2, %c0_3], %1 {strides = array<i32>} : memref<80x16xbf16, #tpu.memory_space<vmem>>, vector<64x16xbf16>,
    %c0_4 = arith.constant 0 : index
    %c0_5 = arith.constant 0 : index
    %c0_6 = arith.constant 0 : index
    %3 = vector.load %arg4[%c0_4, %c0_5, %c0_6] : memref<1x16x16xbf16, #tpu.memory_space<vmem>>, vector<1x16x16xbf16>
    %4 = vector.shape_cast %3 : vector<1x16x16xbf16> to vector<16x16xbf16>
    %c64 = arith.constant 64 : index
    %c0_7 = arith.constant 0 : index
    %5 = vector.load %arg9[%c64, %c0_7] : memref<80x16xbf16, #tpu.memory_space<vmem>>, vector<16x16xbf16>
    tpu.vector_store %arg9[%c64, %c0_7], %4 {strides = array<i32>} : memref<80x16xbf16, #tpu.memory_space<vmem>>, vector<16x16xbf16>,
    %cst = arith.constant 0.000000e+00 : f32
    %6 = vector.broadcast %cst : f32 to vector<64x32xf32>
    %c0_8 = arith.constant 0 : index
    %c0_9 = arith.constant 0 : index
    %7 = vector.load %arg9[%c0_8, %c0_9] : memref<80x16xbf16, #tpu.memory_space<vmem>>, vector<64x16xbf16>
    %c0_10 = arith.constant 0 : index
    %c0_11 = arith.constant 0 : index
    %c0_12 = arith.constant 0 : index
    %8 = vector.load %arg5[%c0_10, %c0_11, %c0_12] : memref<11x16x32xbf16, #tpu.memory_space<vmem>>, vector<1x16x32xbf16>
    %9 = vector.shape_cast %8 : vector<1x16x32xbf16> to vector<16x32xbf16>
    %cst_13 = arith.constant dense<0.000000e+00> : vector<64x32xf32>
    %10 = tpu.matmul %7, %9, %cst_13 {dimension_numbers = #tpu.dot_dimension_numbers<[1], [0], [0], [1], [0, 0, 1, 1], [], []>} : vector<64x16xbf16>, vector<16x32xbf16>, vector<64x32xf32> -> vector<64x32xf32>
    %11 = arith.addf %6, %10 : vector<64x32xf32>
    %c1 = arith.constant 1 : index
    %c0_14 = arith.constant 0 : index
    %12 = vector.load %arg9[%c1, %c0_14] : memref<80x16xbf16, #tpu.memory_space<vmem>>, vector<64x16xbf16>
    %c1_15 = arith.constant 1 : index
    %c0_16 = arith.constant 0 : index
    %c0_17 = arith.constant 0 : index
    %13 = vector.load %arg5[%c1_15, %c0_16, %c0_17] : memref<11x16x32xbf16, #tpu.memory_space<vmem>>, vector<1x16x32xbf16>
    %14 = vector.shape_cast %13 : vector<1x16x32xbf16> to vector<16x32xbf16>
    %cst_18 = arith.constant dense<0.000000e+00> : vector<64x32xf32>
    %15 = tpu.matmul %12, %14, %cst_18 {dimension_numbers = #tpu.dot_dimension_numbers<[1], [0], [0], [1], [0, 0, 1, 1], [], []>} : vector<64x16xbf16>, vector<16x32xbf16>, vector<64x32xf32> -> vector<64x32xf32>
    %16 = arith.addf %11, %15 : vector<64x32xf32>
    %c2 = arith.constant 2 : index
    %c0_19 = arith.constant 0 : index
    %17 = vector.load %arg9[%c2, %c0_19] : memref<80x16xbf16, #tpu.memory_space<vmem>>, vector<64x16xbf16>
    %c2_20 = arith.constant 2 : index
    %c0_21 = arith.constant 0 : index
    %c0_22 = arith.constant 0 : index
    %18 = vector.load %arg5[%c2_20, %c0_21, %c0_22] : memref<11x16x32xbf16, #tpu.memory_space<vmem>>, vector<1x16x32xbf16>
    %19 = vector.shape_cast %18 : vector<1x16x32xbf16> to vector<16x32xbf16>
    %cst_23 = arith.constant dense<0.000000e+00> : vector<64x32xf32>
    %20 = tpu.matmul %17, %19, %cst_23 {dimension_numbers = #tpu.dot_dimension_numbers<[1], [0], [0], [1], [0, 0, 1, 1], [], []>} : vector<64x16xbf16>, vector<16x32xbf16>, vector<64x32xf32> -> vector<64x32xf32>
    %21 = arith.addf %16, %20 : vector<64x32xf32>
    %c3 = arith.constant 3 : index
    %c0_24 = arith.constant 0 : index
    %22 = vector.load %arg9[%c3, %c0_24] : memref<80x16xbf16, #tpu.memory_space<vmem>>, vector<64x16xbf16>
    %c3_25 = arith.constant 3 : index
    %c0_26 = arith.constant 0 : index
    %c0_27 = arith.constant 0 : index
    %23 = vector.load %arg5[%c3_25, %c0_26, %c0_27] : memref<11x16x32xbf16, #tpu.memory_space<vmem>>, vector<1x16x32xbf16>
    %24 = vector.shape_cast %23 : vector<1x16x32xbf16> to vector<16x32xbf16>
    %cst_28 = arith.constant dense<0.000000e+00> : vector<64x32xf32>
    %25 = tpu.matmul %22, %24, %cst_28 {dimension_numbers = #tpu.dot_dimension_numbers<[1], [0], [0], [1], [0, 0, 1, 1], [], []>} : vector<64x16xbf16>, vector<16x32xbf16>, vector<64x32xf32> -> vector<64x32xf32>
    %26 = arith.addf %21, %25 : vector<64x32xf32>
    %c4 = arith.constant 4 : index
    %c0_29 = arith.constant 0 : index
    %27 = vector.load %arg9[%c4, %c0_29] : memref<80x16xbf16, #tpu.memory_space<vmem>>, vector<64x16xbf16>
    %c4_30 = arith.constant 4 : index
    %c0_31 = arith.constant 0 : index
    %c0_32 = arith.constant 0 : index
    %28 = vector.load %arg5[%c4_30, %c0_31, %c0_32] : memref<11x16x32xbf16, #tpu.memory_space<vmem>>, vector<1x16x32xbf16>
    %29 = vector.shape_cast %28 : vector<1x16x32xbf16> to vector<16x32xbf16>
    %cst_33 = arith.constant dense<0.000000e+00> : vector<64x32xf32>
    %30 = tpu.matmul %27, %29, %cst_33 {dimension_numbers = #tpu.dot_dimension_numbers<[1], [0], [0], [1], [0, 0, 1, 1], [], []>} : vector<64x16xbf16>, vector<16x32xbf16>, vector<64x32xf32> -> vector<64x32xf32>
    %31 = arith.addf %26, %30 : vector<64x32xf32>
    %c5 = arith.constant 5 : index
    %c0_34 = arith.constant 0 : index
    %32 = vector.load %arg9[%c5, %c0_34] : memref<80x16xbf16, #tpu.memory_space<vmem>>, vector<64x16xbf16>
    %c5_35 = arith.constant 5 : index
    %c0_36 = arith.constant 0 : index
    %c0_37 = arith.constant 0 : index
    %33 = vector.load %arg5[%c5_35, %c0_36, %c0_37] : memref<11x16x32xbf16, #tpu.memory_space<vmem>>, vector<1x16x32xbf16>
    %34 = vector.shape_cast %33 : vector<1x16x32xbf16> to vector<16x32xbf16>
    %cst_38 = arith.constant dense<0.000000e+00> : vector<64x32xf32>
    %35 = tpu.matmul %32, %34, %cst_38 {dimension_numbers = #tpu.dot_dimension_numbers<[1], [0], [0], [1], [0, 0, 1, 1], [], []>} : vector<64x16xbf16>, vector<16x32xbf16>, vector<64x32xf32> -> vector<64x32xf32>
    %36 = arith.addf %31, %35 : vector<64x32xf32>
    %c6 = arith.constant 6 : index
    %c0_39 = arith.constant 0 : index
    %37 = vector.load %arg9[%c6, %c0_39] : memref<80x16xbf16, #tpu.memory_space<vmem>>, vector<64x16xbf16>
    %c6_40 = arith.constant 6 : index
    %c0_41 = arith.constant 0 : index
    %c0_42 = arith.constant 0 : index
    %38 = vector.load %arg5[%c6_40, %c0_41, %c0_42] : memref<11x16x32xbf16, #tpu.memory_space<vmem>>, vector<1x16x32xbf16>
    %39 = vector.shape_cast %38 : vector<1x16x32xbf16> to vector<16x32xbf16>
    %cst_43 = arith.constant dense<0.000000e+00> : vector<64x32xf32>
    %40 = tpu.matmul %37, %39, %cst_43 {dimension_numbers = #tpu.dot_dimension_numbers<[1], [0], [0], [1], [0, 0, 1, 1], [], []>} : vector<64x16xbf16>, vector<16x32xbf16>, vector<64x32xf32> -> vector<64x32xf32>
    %41 = arith.addf %36, %40 : vector<64x32xf32>
    %c7 = arith.constant 7 : index
    %c0_44 = arith.constant 0 : index
    %42 = vector.load %arg9[%c7, %c0_44] : memref<80x16xbf16, #tpu.memory_space<vmem>>, vector<64x16xbf16>
    %c7_45 = arith.constant 7 : index
    %c0_46 = arith.constant 0 : index
    %c0_47 = arith.constant 0 : index
    %43 = vector.load %arg5[%c7_45, %c0_46, %c0_47] : memref<11x16x32xbf16, #tpu.memory_space<vmem>>, vector<1x16x32xbf16>
    %44 = vector.shape_cast %43 : vector<1x16x32xbf16> to vector<16x32xbf16>
    %cst_48 = arith.constant dense<0.000000e+00> : vector<64x32xf32>
    %45 = tpu.matmul %42, %44, %cst_48 {dimension_numbers = #tpu.dot_dimension_numbers<[1], [0], [0], [1], [0, 0, 1, 1], [], []>} : vector<64x16xbf16>, vector<16x32xbf16>, vector<64x32xf32> -> vector<64x32xf32>
    %46 = arith.addf %41, %45 : vector<64x32xf32>
    %c8 = arith.constant 8 : index
    %c0_49 = arith.constant 0 : index
    %47 = vector.load %arg9[%c8, %c0_49] : memref<80x16xbf16, #tpu.memory_space<vmem>>, vector<64x16xbf16>
    %c8_50 = arith.constant 8 : index
    %c0_51 = arith.constant 0 : index
    %c0_52 = arith.constant 0 : index
    %48 = vector.load %arg5[%c8_50, %c0_51, %c0_52] : memref<11x16x32xbf16, #tpu.memory_space<vmem>>, vector<1x16x32xbf16>
    %49 = vector.shape_cast %48 : vector<1x16x32xbf16> to vector<16x32xbf16>
    %cst_53 = arith.constant dense<0.000000e+00> : vector<64x32xf32>
    %50 = tpu.matmul %47, %49, %cst_53 {dimension_numbers = #tpu.dot_dimension_numbers<[1], [0], [0], [1], [0, 0, 1, 1], [], []>} : vector<64x16xbf16>, vector<16x32xbf16>, vector<64x32xf32> -> vector<64x32xf32>
    %51 = arith.addf %46, %50 : vector<64x32xf32>
    %c9 = arith.constant 9 : index
    %c0_54 = arith.constant 0 : index
    %52 = vector.load %arg9[%c9, %c0_54] : memref<80x16xbf16, #tpu.memory_space<vmem>>, vector<64x16xbf16>
    %c9_55 = arith.constant 9 : index
    %c0_56 = arith.constant 0 : index
    %c0_57 = arith.constant 0 : index
    %53 = vector.load %arg5[%c9_55, %c0_56, %c0_57] : memref<11x16x32xbf16, #tpu.memory_space<vmem>>, vector<1x16x32xbf16>
    %54 = vector.shape_cast %53 : vector<1x16x32xbf16> to vector<16x32xbf16>
    %cst_58 = arith.constant dense<0.000000e+00> : vector<64x32xf32>
    %55 = tpu.matmul %52, %54, %cst_58 {dimension_numbers = #tpu.dot_dimension_numbers<[1], [0], [0], [1], [0, 0, 1, 1], [], []>} : vector<64x16xbf16>, vector<16x32xbf16>, vector<64x32xf32> -> vector<64x32xf32>
    %56 = arith.addf %51, %55 : vector<64x32xf32>
    %c10 = arith.constant 10 : index
    %c0_59 = arith.constant 0 : index
    %57 = vector.load %arg9[%c10, %c0_59] : memref<80x16xbf16, #tpu.memory_space<vmem>>, vector<64x16xbf16>
    %c10_60 = arith.constant 10 : index
    %c0_61 = arith.constant 0 : index
    %c0_62 = arith.constant 0 : index
    %58 = vector.load %arg5[%c10_60, %c0_61, %c0_62] : memref<11x16x32xbf16, #tpu.memory_space<vmem>>, vector<1x16x32xbf16>
    %59 = vector.shape_cast %58 : vector<1x16x32xbf16> to vector<16x32xbf16>
    %cst_63 = arith.constant dense<0.000000e+00> : vector<64x32xf32>
    %60 = tpu.matmul %57, %59, %cst_63 {dimension_numbers = #tpu.dot_dimension_numbers<[1], [0], [0], [1], [0, 0, 1, 1], [], []>} : vector<64x16xbf16>, vector<16x32xbf16>, vector<64x32xf32> -> vector<64x32xf32>
    %61 = arith.addf %56, %60 : vector<64x32xf32>
    %c0_64 = arith.constant 0 : index
    %c0_65 = arith.constant 0 : index
    %62 = vector.load %arg6[%c0_64, %c0_65] : memref<1x32xf32, #tpu.memory_space<vmem>>, vector<1x32xf32>
    %63 = vector.broadcast %62 : vector<1x32xf32> to vector<64x32xf32>
    %64 = arith.mulf %61, %63 : vector<64x32xf32>
    %c0_66 = arith.constant 0 : index
    %c0_67 = arith.constant 0 : index
    %65 = vector.load %arg7[%c0_66, %c0_67] : memref<1x32xf32, #tpu.memory_space<vmem>>, vector<1x32xf32>
    %66 = vector.broadcast %65 : vector<1x32xf32> to vector<64x32xf32>
    %67 = arith.addf %64, %66 : vector<64x32xf32>
    %cst_68 = arith.constant 0.000000e+00 : f32
    %cst_69 = arith.constant 2.000000e+01 : f32
    %68 = vector.broadcast %cst_68 : f32 to vector<64x32xf32>
    %69 = arith.maximumf %68, %67 : vector<64x32xf32>
    %70 = vector.broadcast %cst_69 : f32 to vector<64x32xf32>
    %71 = arith.minimumf %70, %69 : vector<64x32xf32>
    %72 = arith.truncf %71 : vector<64x32xf32> to vector<64x32xbf16>
    %c0_70 = arith.constant 0 : index
    %c0_71 = arith.constant 0 : index
    %c0_72 = arith.constant 0 : index
    %73 = vector.load %arg8[%c0_70, %c0_71, %c0_72] : memref<1x64x32xbf16, #tpu.memory_space<vmem>>, vector<1x64x32xbf16>
    %74 = vector.shape_cast %73 : vector<1x64x32xbf16> to vector<64x32xbf16>
    %75 = vector.shape_cast %72 : vector<64x32xbf16> to vector<1x64x32xbf16>
    tpu.vector_store %arg8[%c0_70, %c0_71, %c0_72], %75 {strides = array<i32>} : memref<1x64x32xbf16, #tpu.memory_space<vmem>>, vector<1x64x32xbf16>,
    return
  }
  func.func @transform_0(%arg0: i32, %arg1: i32, %arg2: i32) -> (i32, i32, i32) {
    %c0_i32 = arith.constant 0 : i32
    %c0_i32_0 = arith.constant 0 : i32
    return %arg1, %arg2, %c0_i32 : i32, i32, i32
  }
  func.func @transform_1(%arg0: i32, %arg1: i32, %arg2: i32) -> (i32, i32, i32) {
    %c1_i32 = arith.constant 1 : i32
    %0 = arith.addi %arg2, %c1_i32 : i32
    %c4_i32 = arith.constant 4 : i32
    %1 = arith.muli %0, %c4_i32 : i32
    %c0_i32 = arith.constant 0 : i32
    %c0_i32_0 = arith.constant 0 : i32
    return %arg1, %1, %c0_i32 : i32, i32, i32
  }
  func.func @transform_2(%arg0: i32, %arg1: i32, %arg2: i32) -> (i32, i32, i32) {
    %c0_i32 = arith.constant 0 : i32
    %c0_i32_0 = arith.constant 0 : i32
    %c0_i32_1 = arith.constant 0 : i32
    return %c0_i32, %c0_i32_0, %arg0 : i32, i32, i32
  }
  func.func @transform_3(%arg0: i32, %arg1: i32, %arg2: i32) -> (i32, i32) {
    %c0_i32 = arith.constant 0 : i32
    %c0_i32_0 = arith.constant 0 : i32
    return %c0_i32, %arg0 : i32, i32
  }
  func.func @transform_4(%arg0: i32, %arg1: i32, %arg2: i32) -> (i32, i32) {
    %c0_i32 = arith.constant 0 : i32
    %c0_i32_0 = arith.constant 0 : i32
    return %c0_i32, %arg0 : i32, i32
  }
  func.func @transform_5(%arg0: i32, %arg1: i32, %arg2: i32) -> (i32, i32, i32) {
    %c0_i32 = arith.constant 0 : i32
    return %arg1, %arg2, %arg0 : i32, i32, i32
  }
}

</mosaic_0001>

<bundles_post_ra>
// kernel: tpu_custom_call.1
= control target key start
LH: loop header
LB: loop body
LE: loop exit
PB: predicated region body
PF: predicated region fallthrough
CT: control target
= control target key end

     0   :  { %s2376_s18 = smov 0   ;;  %s2378_s19 = smov 0   ;;  %s2768_s0 = inlined_call_operand.vmem [shape: bf16[2,80,16], index: 0, kind: input, shape index: {}]   ;;  %s2769_s1 = inlined_call_operand.vmem [shape: bf16[2,80,16], index: 1, kind: input, shape index: {}]   ;;  %s2770_s2 = inlined_call_operand.vmem [shape: bf16[11,16,32], index: 2, kind: input, shape index: {}]   ;;  %s2771_s3 = inlined_call_operand.vmem [shape: f32[1,32], index: 3, kind: input, shape index: {}]   ;;  %s2772_s4 = inlined_call_operand.vmem [shape: f32[1,32], index: 4, kind: input, shape index: {}]   ;;  %s2773_s5 = inlined_call_operand.vmem [shape: bf16[2,64,32], index: 5, kind: output, shape index: {}]  }
   0x1   :  { %s2380_s20 = smov 0  }
   0x2 LB: > { %s30_s21 = sadd.s32 1, %s2340_s19  ;;  %p1979_p0 = scmp.ge.s32.totalorder %s2344_s20, 1  ;;  %s2344_s20 = sphi %s2380_s20, %s15_s20   ;;  %s2340_s19 = sphi %s2378_s19, %s2787_s19   ;;  %s2336_s18 = sphi %s2376_s18, %s2786_s18  }
   0x3   : > { %p32_p1 = scmp.ge.s32.totalorder %s30_s21, 2  ;;  %p275_p2 = scmp.lt.s32.totalorder %s2344_s20, 3 }
   0x5   : > { %s2789_s21 = smov (%p32_p1, %s30_s21), 0  ;;  %p276_p3 = pnand %p1979_p0, %p275_p2 }
   0x7   : > { %279 = sbr.rel (%p276_p3) target bundleno = 334 (0x14e), region = 40 }
   0xc   : > { %v2297_v0 = vld [vmem:[%s2770_s2 + $0x8] sm:$0xff]   ;;  %p344_p4 = scmp.lt.s32.totalorder %s2336_s18, 1  ;;  %v2402_v1 = vld [vmem:[%s2770_s2] sm:$0xff]   ;;  %v2407_v2 = vld [vmem:[%s2770_s2 + $0x10] sm:$0xff]   ;;  %vm403_vm0 = vcmask 125952   ;;  %vm496_vm2 = vcmask 130048  }
   0xd   : > { %2268 = vmatprep.subr.bf16.mxu1 %v2297_v0  ;;  %2158 = vmatprep.subr.bf16.mxu0 %v2297_v0  ;;  %vm453_vm1 = vsmask.f32 7424  ;;  %vm660_vm3 = vcmask 1046528   ;;  %v2305_v51 = vld [vmem:[%s2770_s2 + $0x18] sm:$0xff]   ;;  %v2306_v54 = vld [vmem:[%s2770_s2 + $0x20] sm:$0xff]   ;;  %vm896_vm4 = vcmask 1045504  }
   0xe   : > { %s2791_s18 = smov (!%p344_p4, %s2336_s18), 1  ;;  %2269 = vmatpush3.bf16.msra.mxu1 %v2297_v0  ;;  %2159 = vmatpush3.bf16.msra.mxu0 %v2297_v0  ;;  %vm768_vm5 = vsmask.f32 6400  ;;  %vm1132_vm6 = vcmask 1044480   ;;  %vm1004_vm7 = vsmask.f32 5376 }
   0xf   : > { %s2270_s28 = smul.u32 40, %s2791_s18  ;;  %2168 = vmatprep.subr.bf16.mxu1 %v2402_v1  ;;  %2178 = vmatprep.subr.bf16.mxu0 %v2407_v2  ;;  %vm1240_vm8 = vsmask.f32 4352  ;;  %vm1806_vm9 = vcmask 257024  }
  0x11   : > { %s351_s6 = scalar_lea.vmem %s2768_s0, %s2270_s28  ;;  %s2093_s7 = sadd.s32 32, %s2270_s28 }
  0x12   : > { %v395_v3 = vld [vmem:[%s351_s6] sm:$0xf]  ;;  %v396_v4 = vld [vmem:[%s351_s6 + $0x4] sm:$0xf]  ;;  %v397_v5 = vld [vmem:[%s351_s6 + $0x8] sm:$0xf]  ;;  %s2418_s10 = scalar_lea.vmem %s2769_s1, %s2093_s7 }
  0x13   : > { %v398_v6 = vld [vmem:[%s351_s6 + $0xc] sm:$0xf]  ;;  %404 = vst.msk [vmem:[#allocation2] sm:$0xf] %vm403_vm0, %v395_v3  ;;  %405 = vst.msk [vmem:[#allocation2 + $0x4] sm:$0xf] %vm403_vm0, %v396_v4 }
  0x14   : > { %406 = vst.msk [vmem:[#allocation2 + $0x8] sm:$0xf] %vm403_vm0, %v397_v5  ;;  %v399_v7 = vld [vmem:[%s351_s6 + $0x10] sm:$0xf]  ;;  %v400_v8 = vld [vmem:[%s351_s6 + $0x14] sm:$0xf] }
  0x15   : > { %407 = vst.msk [vmem:[#allocation2 + $0xc] sm:$0xf] %vm403_vm0, %v398_v6  ;;  %v401_v9 = vld [vmem:[%s351_s6 + $0x18] sm:$0xf]  ;;  %v402_v10 = vld [vmem:[%s351_s6 + $0x1c] sm:$0xf] }
  0x16   : > { %408 = vst.msk [vmem:[#allocation2 + $0x10] sm:$0xf] %vm403_vm0, %v399_v7  ;;  %409 = vst.msk [vmem:[#allocation2 + $0x14] sm:$0xf] %vm403_vm0, %v400_v8  ;;  %v412_v11 = vld [vmem:[%s2418_s10] sm:$0xf] }
  0x17   : > { %410 = vst.msk [vmem:[#allocation2 + $0x18] sm:$0xf] %vm403_vm0, %v401_v9  ;;  %411 = vst.msk [vmem:[#allocation2 + $0x1c] sm:$0xf] %vm403_vm0, %v402_v10  ;;  %v413_v60 = vld [vmem:[%s2418_s10 + $0x4] sm:$0xf] }
  0x18   : > { %414 = vst.msk [vmem:[#allocation2 + $0x20] sm:$0xf] %vm403_vm0, %v412_v11  ;;  %415 = vst.msk [vmem:[#allocation2 + $0x24] sm:$0xf] %vm403_vm0, %v413_v60  ;;  %v2307_v3 = vld [vmem:[%s2770_s2 + $0x28] sm:$0xff]   ;;  %v2308_v5 = vld [vmem:[%s2770_s2 + $0x30] sm:$0xff]  }
  0x19   : > { %s2094_s10 = sshll.u32 %s2791_s18, 5 }
  0x1a   : > { %v416_v12 = vld [vmem:[#allocation2] sm:$0xf]  ;;  %v2430_v13 = vld [vmem:[#allocation2 + $0x4] sm:$0xf]  ;;  %s2732_s12 = scalar_lea.vmem %s2773_s5, %s2094_s10 }
  0x1b   : > { %v2432_v14 = vld [vmem:[#allocation2 + $0x8] sm:$0xf]  ;;  %v1986_v16 = vcombine.low %v416_v12, %v2430_v13  ;;  %v653_v32 = vld [vmem:[#allocation2] sm:$0xe] }
  0x1c   : > { %v2434_v15 = vld [vmem:[#allocation2 + $0xc] sm:$0xf]  ;;  %v2003_v39 = vcombine.low %v653_v32, %v2430_v13  ;;  %v889_v58 = vld [vmem:[#allocation2] sm:$0xc] }
  0x1d   : > { %v2437_v17 = vld [vmem:[#allocation2 + $0x10] sm:$0xf]  ;;  %v2439_v18 = vld [vmem:[#allocation2 + $0x14] sm:$0xf]  ;;  %v2443_v19 = vcombine.low %v2432_v14, %v2434_v15  ;;  %v455_v23 = vshrl.u32 %v1986_v16, 16  ;;  %v457_v24 = vshll.u32 %v1986_v16, 16  ;;  %v2019_v62 = vcombine.low %v889_v58, %v2430_v13 }
  0x1e   : > { %v2445_v20 = vld [vmem:[#allocation2 + $0x18] sm:$0xf]  ;;  %v2447_v21 = vld [vmem:[#allocation2 + $0x1c] sm:$0xf]  ;;  %v2451_v22 = vcombine.low %v2437_v17, %v2439_v18  ;;  %v661_v46 = vrot.slane %v2003_v39, 1  ;;  %v770_v56 = vshrl.u32 %v2003_v39, 16 }
  0x1f   : > { %v2455_v25 = vcombine.low %v2445_v20, %v2447_v21  ;;  %v2457_v26 = vld [vmem:[#allocation2 + $0x20] ss:$0 sps:$4 sm:$0x11]   ;;  %v2053_v27 = vcombine.low %v2439_v18, %v2445_v20  ;;  %v2462_v28 = vshll.u32 %v2443_v19, 16  ;;  %v2465_v29 = vshrl.u32 %v2443_v19, 16 }
  0x20   : > { %v2468_v30 = vshll.u32 %v2451_v22, 16  ;;  %v2471_v31 = vshrl.u32 %v2451_v22, 16  ;;  %v459_v33 = vrot.slane %v457_v24, 1  ;;  %v486_v36 = vshll.u32 %v2457_v26, 16 }
  0x21   : > { %v2474_v34 = vshll.u32 %v2455_v25, 16  ;;  %v2477_v35 = vshrl.u32 %v2455_v25, 16  ;;  %v464_v37 = vrot.slane %v2462_v28, 1  ;;  %v662_v43 = vrot.slane %v2443_v19, 1 }
  0x22   : > { %v472_v38 = vrot.slane %v2468_v30, 1  ;;  %v460_v40 = vor.u32 %v459_v33, %v455_v23  ;;  %v488_v42 = vrot.slane %v486_v36, 1  ;;  %v664_v55 = vrot.slane %v2451_v22, 1 }
  0x23   : > { %v480_v41 = vrot.slane %v2474_v34, 1  ;;  %v468_v44 = vor.u32 %v2465_v29, %v464_v37  ;;  %v663_v53 = vsel %vm660_vm3, %v661_v46, %v662_v43  ;;  %v773_v57 = vshll.u32 %v2003_v39, 16 }
  0x24   : > { %v476_v45 = vor.u32 %v2471_v31, %v472_v38  ;;  %v465_v47 = vsel %vm453_vm1, %v460_v40, %v464_v37  ;;  %v666_v59 = vrot.slane %v2455_v25, 1  ;;  %v665_v61 = vsel %vm660_vm3, %v662_v43, %v664_v55  ;;  %v1125_v43 = vld [vmem:[#allocation2] sm:$0x8] }
  0x25   : > { %v484_v48 = vor.u32 %v2477_v35, %v480_v41  ;;  %2160 = vmatprep.mubr.msk.bf16.mxu0 %vm496_vm2, %v465_v47  ;;  %v473_v50 = vsel %vm453_vm1, %v468_v44, %v472_v38  ;;  %v772_v63 = vrot.slane %v770_v56, 1  ;;  %v775_v0 = vrot.slane %v773_v57, 2  ;;  %v2311_v57 = vld [vmem:[%s2770_s2 + $0x40] sm:$0xff]  }
  0x26   : > { %v481_v49 = vsel %vm453_vm1, %v476_v45, %v480_v41  ;;  %2161 = vmatmul.mubr.msk.bf16.vlgmr.msra.gmra.mxu0 %vm496_vm2, %v473_v50  ;;  %v667_v4 = vsel %vm660_vm3, %v664_v55, %v666_v59  ;;  %v668_v6 = vrot.slane %v2457_v26, 1  ;;  %v897_v7 = vrot.slane %v2019_v62, 2  ;;  %v2310_v55 = vld [vmem:[%s2770_s2 + $0x38] sm:$0xff]  }
  0x27   : > { %2164 = vmatprep.mubr.msk.bf16.mxu1 %vm496_vm2, %v481_v49  ;;  %v489_v52 = vsel %vm453_vm1, %v484_v48, %v488_v42  ;;  %2179 = vmatpush3.bf16.msra.mxu0 %v2407_v2  ;;  %v778_v2 = vrot.slane %v2462_v28, 2  ;;  %v898_v8 = vrot.slane %v2443_v19, 2  ;;  %v776_v9 = vor.u32 %v775_v0, %v772_v63 }
  0x28   : > { %2165 = vmatmul.mubr.msk.bf16.vlgmr.msra.gmra.mxu1 %vm496_vm2, %v489_v52  ;;  %2180 = vmatprep.mubr.msk.bf16.mxu0 %vm496_vm2, %v663_v53  ;;  %v669_v11 = vsel %vm660_vm3, %v666_v59, %v668_v6  ;;  %v781_v12 = vrot.slane %v2471_v31, 1  ;;  %v782_v24 = vrot.slane %v2468_v30, 2  ;;  %v785_v26 = vrot.slane %v2477_v35, 1  ;;  %v2312_v6 = vld [vmem:[#allocation2 + $0x20] ss:$0 sps:$4 sm:$0x77]  }
  0x29   : > { %2169 = vmatpush3.bf16.msra.mxu1 %v2402_v1  ;;  %2170 = vmatprep.mubr.msk.bf16.mxu1 %vm496_vm2, %v1986_v16  ;;  %v777_v1 = vrot.slane %v2465_v29, 1  ;;  %v2309_v16 = vld [vmem:[#allocation2 + $0x20] ss:$0 sps:$4 sm:$0x33]   ;;  %v899_v23 = vsel %vm896_vm4, %v897_v7, %v898_v8  ;;  %v786_v32 = vrot.slane %v2474_v34, 2  ;;  %v900_v36 = vrot.slane %v2451_v22, 2 }
  0x2a   : > { %2188 = vmatprep.subr.bf16.mxu1 %v2305_v51  ;;  %2198 = vmatprep.subr.bf16.mxu0 %v2306_v54  ;;  %v790_v37 = vshrl.u32 %v2309_v16, 16  ;;  %v793_v38 = vshll.u32 %v2309_v16, 16  ;;  %v783_v39 = vor.u32 %v782_v24, %v781_v12  ;;  %v1006_v41 = vshrl.u32 %v2019_v62, 16 }
  0x2b   : > { %v779_v10 = vor.u32 %v778_v2, %v777_v1  ;;  %v787_v40 = vor.u32 %v786_v32, %v785_v26  ;;  %v1009_v42 = vshll.u32 %v2019_v62, 16  ;;  %v902_v44 = vrot.slane %v2455_v25, 2 }
  0x2c   : > { %v901_v45 = vsel %vm896_vm4, %v898_v8, %v900_v36  ;;  %v792_v46 = vrot.slane %v790_v37, 1  ;;  %v795_v47 = vrot.slane %v793_v38, 2  ;;  %v2035_v50 = vcombine.low %v1125_v43, %v2430_v13 }
  0x2d   : > { %v780_v33 = vsel %vm768_vm5, %v776_v9, %v779_v10  ;;  %v784_v48 = vsel %vm768_vm5, %v779_v10, %v783_v39  ;;  %v788_v49 = vsel %vm768_vm5, %v783_v39, %v787_v40  ;;  %v1011_v52 = vrot.slane %v1009_v42, 3  ;;  %v2314_v42 = vld [vmem:[%s2770_s2 + $0x50] sm:$0xff]  }
  0x2e   : > { %2181 = vmatmul.mubr.msk.bf16.vlgmr.msra.gmra.mxu0 %vm496_vm2, %v665_v61  ;;  %v1013_v53 = vrot.slane %v2465_v29, 2  ;;  %v903_v56 = vsel %vm896_vm4, %v900_v36, %v902_v44  ;;  %v796_v58 = vor.u32 %v795_v47, %v792_v46  ;;  %v904_v59 = vrot.slane %v2309_v16, 2  ;;  %v1459_v46 = vld [vmem:[#allocation2 + $0x4] sm:$0xf]  ;;  %v1460_v47 = vld [vmem:[#allocation2 + $0x8] sm:$0xf] }
  0x2f   : > { %2199 = vmatpush3.bf16.msra.mxu0 %v2306_v54  ;;  %2184 = vmatprep.mubr.msk.bf16.mxu0 %vm496_vm2, %v667_v4  ;;  %v1014_v54 = vrot.slane %v2462_v28, 3  ;;  %v1133_v60 = vrot.slane %v2035_v50, 3  ;;  %v1134_v61 = vrot.slane %v2443_v19, 3  ;;  %v1017_v2 = vrot.slane %v2471_v31, 2 }
  0x30   : > { %2171 = vmatmul.mubr.msk.bf16.vlgmr.msra.gmra.mxu1 %vm496_vm2, %v2443_v19  ;;  %2218 = vmatprep.subr.bf16.mxu0 %v2308_v5  ;;  %v797_v0 = vsel %vm768_vm5, %v787_v40, %v796_v58  ;;  %v905_v1 = vsel %vm896_vm4, %v902_v44, %v904_v59  ;;  %v1018_v4 = vrot.slane %v2468_v30, 3  ;;  %v1021_v19 = vrot.slane %v2477_v35, 2  ;;  %v2317_v58 = vld [vmem:[#allocation2 + $0xc] sm:$0xff]  }
  0x31   : > { %2189 = vmatpush3.bf16.msra.mxu1 %v2305_v51  ;;  %2174 = vmatprep.mubr.msk.bf16.mxu1 %vm496_vm2, %v2451_v22  ;;  %v1008_v51 = vrot.slane %v1006_v41, 2  ;;  %v1015_v63 = vor.u32 %v1014_v54, %v1013_v53  ;;  %v1136_v8 = vrot.slane %v2451_v22, 3  ;;  %v1029_v12 = vshll.u32 %v2312_v6, 16  ;;  %v2313_v41 = vld [vmem:[%s2770_s2 + $0x48] sm:$0xff]  }
  0x32   : > { %2208 = vmatprep.subr.bf16.mxu1 %v2307_v3  ;;  %v1019_v9 = vor.u32 %v1018_v4, %v1017_v2  ;;  %v1242_v16 = vshrl.u32 %v2035_v50, 16  ;;  %v1138_v24 = vrot.slane %v2455_v25, 3  ;;  %v1249_v39 = vrot.slane %v2465_v29, 3  ;;  %v2319_v4 = vld [vmem:[#allocation2 + $0x14] sm:$0xff]  }
  0x33   : > { %v1012_v62 = vor.u32 %v1011_v52, %v1008_v51  ;;  %v1137_v26 = vsel %vm1132_vm6, %v1134_v61, %v1136_v8  ;;  %v1031_v37 = vrot.slane %v1029_v12, 3  ;;  %v1250_v40 = vrot.slane %v2462_v28, 4 }
  0x34   : > { %v1020_v32 = vsel %vm1004_vm7, %v1015_v63, %v1019_v9  ;;  %v1244_v38 = vrot.slane %v1242_v16, 3  ;;  %v1140_v43 = vrot.slane %v2312_v6, 3  ;;  %v1253_v51 = vrot.slane %v2471_v31, 3 }
  0x35   : > { %v1016_v7 = vsel %vm1004_vm7, %v1012_v62, %v1015_v63  ;;  %v1251_v44 = vor.u32 %v1250_v40, %v1249_v39  ;;  %v1254_v52 = vrot.slane %v2468_v30, 4  ;;  %v1631_v20 = vrot.slane %v2319_v4, 1 }
  0x36   : > { %2185 = vmatmul.mubr.msk.bf16.gmra.mxu0 %vm496_vm2, %v669_v11  ;;  %v1026_v11 = vshrl.u32 %v2312_v6, 16 }
  0x37   : > { %2200 = vmatprep.mubr.msk.bf16.mxu0 %vm496_vm2, %v899_v23  ;;  %v1245_v23 = vshll.u32 %v2035_v50, 16 }
  0x38   : > { %2175 = vmatmul.mubr.msk.bf16.gmra.mxu1 %vm496_vm2, %v2455_v25  ;;  %v1028_v36 = vrot.slane %v1026_v11, 2  ;;  %v1139_v25 = vsel %vm1132_vm6, %v1136_v8, %v1138_v24  ;;  %v1506_v11 = vshrl.u32 %v2317_v58, 16 }
  0x39   : > { %2190 = vmatprep.mubr.msk.bf16.mxu1 %vm496_vm2, %v780_v33  ;;  %v1247_v22 = vrot.slane %v1245_v23, 4  ;;  %v1514_v23 = vshrl.u32 %v2319_v4, 16 }
  0x3a   : > { %v1032_v28 = vor.u32 %v1031_v37, %v1028_v36 }
  0x3b   : > { %v1248_v29 = vor.u32 %v1247_v22, %v1244_v38 }
  0x3d   : > { %v1252_v54 = vsel %vm1240_vm8, %v1248_v29, %v1251_v44 }
  0x3e   : > { %2201 = vmatmul.mubr.msk.bf16.vlgmr.msra.gmra.mxu0 %vm496_vm2, %v901_v45  ;;  %v1233_v45 = vld [vmem:[#allocation2 + $0x20] sm:$0xf] }
  0x3f   : > { %2219 = vmatpush3.bf16.msra.mxu0 %v2308_v5  ;;  %2204 = vmatprep.mubr.msk.bf16.mxu0 %vm496_vm2, %v903_v56  ;;  %v1022_v5 = vrot.slane %v2474_v34, 3  ;;  %v2043_v53 = vcombine.low %v1233_v45, %v1233_v45  ;;  %v1258_v56 = vrot.slane %v2474_v34, 4  ;;  %v2054_v8 = vcombine.low %v2447_v21, %v1233_v45 }
  0x40   : > { %2191 = vmatmul.mubr.msk.bf16.vlgmr.msra.gmra.mxu1 %vm496_vm2, %v784_v48  ;;  %2238 = vmatprep.subr.bf16.mxu0 %v2311_v57  ;;  %v1141_v48 = vsel %vm1132_vm6, %v1138_v24, %v1140_v43 }
  0x41   : > { %2209 = vmatpush3.bf16.msra.mxu1 %v2307_v3  ;;  %2194 = vmatprep.mubr.msk.bf16.mxu1 %vm496_vm2, %v788_v49  ;;  %v1135_v3 = vsel %vm1132_vm6, %v1133_v60, %v1134_v61  ;;  %v1023_v10 = vor.u32 %v1022_v5, %v1021_v19  ;;  %v2051_v49 = vcombine.low %v2430_v13, %v2432_v14  ;;  %v1262_v14 = vshrl.u32 %v2043_v53, 16  ;;  %v1621_v60 = vld [vmem:[#allocation2 + $0x4] sm:$0xe] }
  0x42   : > { %2228 = vmatprep.subr.bf16.mxu1 %v2310_v55  ;;  %v1255_v13 = vor.u32 %v1254_v52, %v1253_v51  ;;  %v1265_v31 = vshll.u32 %v2043_v53, 16  ;;  %v2074_v63 = vcombine.low %v1621_v60, %v1460_v47  ;;  %v1629_v19 = vrot.slane %v2317_v58, 1 }
  0x43   : > { %v1024_v33 = vsel %vm1004_vm7, %v1019_v9, %v1023_v10  ;;  %v1033_v50 = vsel %vm1004_vm7, %v1023_v10, %v1032_v28  ;;  %v1264_v61 = vrot.slane %v1262_v14, 3  ;;  %v1510_v9 = vshll.u32 %v2319_v4, 16 }
  0x44   : > { %v1256_v34 = vsel %vm1240_vm8, %v1251_v44, %v1255_v13  ;;  %v1267_v62 = vrot.slane %v1265_v31, 4  ;;  %v1632_v36 = vsel %vm660_vm3, %v1629_v19, %v1631_v20 }
  0x45   : > { %v1512_v18 = vrot.slane %v1510_v9, 1 }
  0x46   : > { %2205 = vmatmul.mubr.msk.bf16.gmra.mxu0 %vm496_vm2, %v905_v1 }
  0x47   : > { %2220 = vmatprep.mubr.msk.bf16.mxu0 %vm496_vm2, %v1135_v3  ;;  %v1502_v3 = vshll.u32 %v2317_v58, 16 }
  0x48   : > { %2195 = vmatmul.mubr.msk.bf16.gmra.mxu1 %vm496_vm2, %v797_v0 }
  0x49   : > { %2210 = vmatprep.mubr.msk.bf16.mxu1 %vm496_vm2, %v1016_v7  ;;  %v1504_v6 = vrot.slane %v1502_v3, 1  ;;  %v2320_v7 = vld [vmem:[#allocation2 + $0x1c] sm:$0xff]  }
  0x4a   : > { %v1518_v24 = vshll.u32 %v2320_v7, 16  ;;  %v1633_v21 = vrot.slane %v2320_v7, 1  ;;  %v1522_v22 = vshrl.u32 %v2320_v7, 16 }
  0x4c   : > { %v1634_v38 = vsel %vm660_vm3, %v1631_v20, %v1633_v21 }
  0x4e   : > { %2221 = vmatmul.mubr.msk.bf16.vlgmr.msra.gmra.mxu0 %vm496_vm2, %v1137_v26  ;;  %v2321_v26 = vld [vmem:[#allocation2 + $0x24] ss:$0 sps:$4 sm:$0x11]  }
  0x4f   : > { %2239 = vmatpush3.bf16.msra.mxu0 %v2311_v57  ;;  %2224 = vmatprep.mubr.msk.bf16.mxu0 %vm496_vm2, %v1139_v25  ;;  %v2062_v57 = vcombine.low %v1459_v46, %v1460_v47  ;;  %v1526_v39 = vshll.u32 %v2321_v26, 16 }
  0x50   : > { %2211 = vmatmul.mubr.msk.bf16.vlgmr.msra.gmra.mxu1 %vm496_vm2, %v1020_v32  ;;  %2258 = vmatprep.subr.bf16.mxu0 %v2314_v42  ;;  %v1516_v32 = vor.u32 %v1514_v23, %v1512_v18 }
  0x51   : > { %2229 = vmatpush3.bf16.msra.mxu1 %v2310_v55  ;;  %2214 = vmatprep.mubr.msk.bf16.mxu1 %vm496_vm2, %v1024_v33  ;;  %v1257_v55 = vrot.slane %v2477_v35, 3  ;;  %v1497_v59 = vshll.u32 %v2062_v57, 16  ;;  %v2052_v35 = vcombine.low %v2434_v15, %v2437_v17  ;;  %v1495_v1 = vshrl.u32 %v2062_v57, 16 }
  0x52   : > { %2248 = vmatprep.subr.bf16.mxu1 %v2313_v41  ;;  %v1268_v15 = vor.u32 %v1267_v62, %v1264_v61  ;;  %v1628_v17 = vrot.slane %v2074_v63, 1  ;;  %v1520_v33 = vrot.slane %v1518_v24, 1 }
  0x53   : > { %v1259_v30 = vor.u32 %v1258_v56, %v1257_v55  ;;  %v1499_v2 = vrot.slane %v1497_v59, 1 }
  0x54   : > { %v1630_v12 = vsel %vm660_vm3, %v1628_v17, %v1629_v19  ;;  %v1521_v40 = vsel %vm453_vm1, %v1516_v32, %v1520_v33  ;;  %v1524_v25 = vor.u32 %v1522_v22, %v1520_v33 }
  0x55   : > { %v1260_v0 = vsel %vm1240_vm8, %v1255_v13, %v1259_v30  ;;  %v1500_v5 = vor.u32 %v1499_v2, %v1495_v1  ;;  %v1269_v10 = vsel %vm1240_vm8, %v1259_v30, %v1268_v15 }
  0x56   : > { %2225 = vmatmul.mubr.msk.bf16.gmra.mxu0 %vm496_vm2, %v1141_v48 }
  0x57   : > { %2240 = vmatprep.mubr.msk.bf16.mxu0 %vm496_vm2, %v2051_v49  ;;  %v1505_v16 = vsel %vm453_vm1, %v1500_v5, %v1504_v6 }
  0x58   : > { %2215 = vmatmul.mubr.msk.bf16.gmra.mxu1 %vm496_vm2, %v1033_v50 }
  0x59   : > { %2230 = vmatprep.mubr.msk.bf16.mxu1 %vm496_vm2, %v1252_v54 }
  0x5e   : > { %2241 = vmatmul.mubr.msk.bf16.vlgmr.msra.gmra.mxu0 %vm496_vm2, %v2052_v35 }
  0x5f   : > { %2259 = vmatpush3.bf16.msra.mxu0 %v2314_v42  ;;  %2244 = vmatprep.mubr.msk.bf16.mxu0 %vm496_vm2, %v2053_v27  ;;  %v1508_v27 = vor.u32 %v1506_v11, %v1504_v6  ;;  %v1528_v42 = vrot.slane %v1526_v39, 1 }
  0x60   : > { %2231 = vmatmul.mubr.msk.bf16.vlgmr.msra.gmra.mxu1 %vm496_vm2, %v1256_v34 }
  0x61   : > { %2249 = vmatpush3.bf16.msra.mxu1 %v2313_v41  ;;  %2234 = vmatprep.mubr.msk.bf16.mxu1 %vm496_vm2, %v1260_v0  ;;  %v1513_v37 = vsel %vm453_vm1, %v1508_v27, %v1512_v18  ;;  %v1635_v41 = vrot.slane %v2321_v26, 1  ;;  %v1529_v28 = vsel %vm453_vm1, %v1524_v25, %v1528_v42 }
  0x63   : > { %v1636_v43 = vsel %vm660_vm3, %v1633_v21, %v1635_v41 }
  0x66   : > { %2245 = vmatmul.mubr.msk.bf16.gmra.mxu0 %vm496_vm2, %v2054_v8 }
  0x67   : > { %2260 = vmatprep.mubr.msk.bf16.mxu0 %vm496_vm2, %v1630_v12 }
  0x68   : > { %2235 = vmatmul.mubr.msk.bf16.gmra.mxu1 %vm496_vm2, %v1269_v10 }
  0x69   : > { %2250 = vmatprep.mubr.msk.bf16.mxu1 %vm496_vm2, %v1505_v16 }
  0x6e   : > { %2261 = vmatmul.mubr.msk.bf16.vlgmr.msra.gmra.mxu0 %vm496_vm2, %v1632_v36 }
  0x6f   : > { %2264 = vmatprep.mubr.msk.bf16.mxu0 %vm496_vm2, %v1634_v38 }
  0x70   : > { %2251 = vmatmul.mubr.msk.bf16.vlgmr.msra.gmra.mxu1 %vm496_vm2, %v1513_v37 }
  0x71   : > { %2254 = vmatprep.mubr.msk.bf16.mxu1 %vm496_vm2, %v1521_v40 }
  0x76   : > { %2265 = vmatmul.mubr.msk.bf16.gmra.mxu0 %vm496_vm2, %v1636_v43 }
  0x78   : > { %2255 = vmatmul.mubr.msk.bf16.gmra.mxu1 %vm496_vm2, %v1529_v28 }
  0xe6   : > { %v2162_v29 = vpop.f32.mrf.mxu0 }
  0xe8   : > { %v2636_v44 = vpop.f32.mrf.mxu1  ;;  %v543_v45 = vpop.f32.mrf.mxu0 }
  0xea   : > { %v2638_v46 = vpop.f32.mrf.mxu1  ;;  %v2163_v47 = vpop.f32.mrf.mxu0 }
  0xec   : > { %v2640_v48 = vpop.f32.mrf.mxu1  ;;  %v546_v49 = vpop.f32.mrf.mxu0 }
  0xee   : > { %v2642_v50 = vpop.f32.mrf.mxu1  ;;  %v2182_v51 = vpop.f32.mrf.mxu0 }
  0xf0   : > { %v2172_v52 = vpop.f32.mrf.mxu1  ;;  %v722_v53 = vpop.f32.mrf.mxu0 }
  0xf1   : > { %v631_v26 = vadd.f32 %v2172_v52, %v2162_v29 }
  0xf2   : > { %v622_v54 = vpop.f32.mrf.mxu1  ;;  %v2183_v55 = vpop.f32.mrf.mxu0 }
  0xf3   : > { %v623_v36 = vadd.f32 %v622_v54, %v543_v45  ;;  %v755_v22 = vadd.f32 %v2182_v51, %v631_v26 }
  0xf4   : > { %v2173_v56 = vpop.f32.mrf.mxu1  ;;  %v725_v57 = vpop.f32.mrf.mxu0 }
  0xf5   : > { %v634_v39 = vadd.f32 %v2173_v56, %v2163_v47  ;;  %v753_v25 = vadd.f32 %v722_v53, %v623_v36 }
  0xf6   : > { %v625_v13 = vpop.f32.mrf.mxu1  ;;  %v2644_v14 = vpop.f32.mrf.mxu0 }
  0xf7   : > { %v626_v42 = vadd.f32 %v625_v13, %v546_v49  ;;  %v756_v52 = vadd.f32 %v2183_v55, %v634_v39 }
  0xf8   : > { %v2176_v31 = vpop.f32.mrf.mxu1  ;;  %v2646_v30 = vpop.f32.mrf.mxu0 }
  0xf9   : > { %v647_v45 = vadd.f32 %v2176_v31, %v2636_v44 }
  0xfa   : > { %v638_v58 = vpop.f32.mrf.mxu1  ;;  %v2648_v59 = vpop.f32.mrf.mxu0 }
  0xfb   : > { %v639_v47 = vadd.f32 %v638_v58, %v2638_v46  ;;  %v759_v13 = vadd.f32 %v2644_v14, %v647_v45 }
  0xfc   : > { %v2177_v60 = vpop.f32.mrf.mxu1  ;;  %v2650_v35 = vpop.f32.mrf.mxu0 }
  0xfd   : > { %v650_v55 = vadd.f32 %v2177_v60, %v2640_v48 }
  0xfe   : > { %v641_v34 = vpop.f32.mrf.mxu1  ;;  %v2202_v61 = vpop.f32.mrf.mxu0 }
  0xff   : > { %v760_v14 = vadd.f32 %v2648_v59, %v650_v55 }
 0x100   : > { %v2192_v62 = vpop.f32.mrf.mxu1  ;;  %v958_v63 = vpop.f32.mrf.mxu0 }
 0x101   : > { %v883_v43 = vadd.f32 %v2192_v62, %v755_v22  ;;  %v642_v62 = vadd.f32 %v641_v34, %v2642_v50 }
 0x102   : > { %v850_v0 = vpop.f32.mrf.mxu1  ;;  %v2203_v1 = vpop.f32.mrf.mxu0 }
 0x103   : > { %v758_v48 = vadd.f32 %v2650_v35, %v642_v62 }
 0x104   : > { %v2193_v2 = vpop.f32.mrf.mxu1  ;;  %v961_v3 = vpop.f32.mrf.mxu0 }
 0x106   : > { %v853_v4 = vpop.f32.mrf.mxu1  ;;  %v2652_v15 = vpop.f32.mrf.mxu0 }
 0x108   : > { %v2196_v17 = vpop.f32.mrf.mxu1  ;;  %v2654_v19 = vpop.f32.mrf.mxu0 }
 0x10a   : > { %v866_v5 = vpop.f32.mrf.mxu1  ;;  %v2656_v6 = vpop.f32.mrf.mxu0 }
 0x10c   : > { %v2658_v7 = vpop.f32.mrf.mxu1  ;;  %v2660_v8 = vpop.f32.mrf.mxu0 }
 0x10e   : > { %v2662_v9 = vpop.f32.mrf.mxu1  ;;  %v2222_v10 = vpop.f32.mrf.mxu0 }
 0x110   : > { %v2212_v11 = vpop.f32.mrf.mxu1  ;;  %v1194_v12 = vpop.f32.mrf.mxu0 }
 0x112   : > { %v1086_v16 = vpop.f32.mrf.mxu1  ;;  %v2223_v23 = vpop.f32.mrf.mxu0 }
 0x114   : > { %v2213_v24 = vpop.f32.mrf.mxu1  ;;  %v2664_v18 = vpop.f32.mrf.mxu0 }
 0x116   : > { %v1089_v20 = vpop.f32.mrf.mxu1  ;;  %v2666_v27 = vpop.f32.mrf.mxu0 }
 0x117   : > { %2774 = vst [vmem:[#allocation3_spill] sm:$0xff] %v2666_v27 }
 0x118   : > { %v2216_v21 = vpop.f32.mrf.mxu1  ;;  %v2668_v32 = vpop.f32.mrf.mxu0 }
 0x119   : > { %2775 = vst [vmem:[#allocation4_spill] sm:$0xff] %v2668_v32  ;;  %v881_v32 = vadd.f32 %v850_v0, %v753_v25 }
 0x11a   : > { %v2670_v33 = vpop.f32.mrf.mxu1  ;;  %v2672_v37 = vpop.f32.mrf.mxu0 }
 0x11b   : > { %2776 = vst [vmem:[#allocation5_spill] sm:$0xff] %v2670_v33  ;;  %2777 = vst [vmem:[#allocation6_spill] sm:$0xff] %v2672_v37  ;;  %v754_v37 = vadd.f32 %v725_v57, %v626_v42  ;;  %v991_v33 = vadd.f32 %v2202_v61, %v883_v43  ;;  %v989_v26 = vadd.f32 %v958_v63, %v881_v32 }
 0x11c   : > { %v2674_v38 = vpop.f32.mrf.mxu1  ;;  %v2676_v40 = vpop.f32.mrf.mxu0  ;;  %v757_v61 = vadd.f32 %v2646_v30, %v639_v47 }
 0x11d   : > { %2778 = vst [vmem:[#allocation7_spill] sm:$0xff] %v2674_v38  ;;  %2779 = vst [vmem:[#allocation8_spill] sm:$0xff] %v2676_v40  ;;  %v884_v38 = vadd.f32 %v2193_v2, %v756_v52  ;;  %v882_v40 = vadd.f32 %v853_v4, %v754_v37  ;;  %v1119_v53 = vadd.f32 %v2212_v11, %v991_v33 }
 0x11e   : > { %v2678_v41 = vpop.f32.mrf.mxu1  ;;  %v2242_v28 = vpop.f32.mrf.mxu0  ;;  %v1117_v31 = vadd.f32 %v1086_v16, %v989_v26  ;;  %v887_v2 = vadd.f32 %v2196_v17, %v759_v13  ;;  %v885_v60 = vadd.f32 %v866_v5, %v757_v61  ;;  %v888_v17 = vadd.f32 %v2658_v7, %v760_v14  ;;  %v2781_v43 = vld [vmem:[#allocation3_spill] sm:$0xff]  ;;  %v2714_v26 = vld [vmem:[%s2772_s4] ss:$0 sm:$0xff] }
 0x11f   : > { %v992_v44 = vadd.f32 %v2203_v1, %v884_v38  ;;  %v990_v58 = vadd.f32 %v961_v3, %v882_v40  ;;  %v1227_v63 = vadd.f32 %v2222_v10, %v1119_v53  ;;  %v886_v3 = vadd.f32 %v2662_v9, %v758_v48 }
 0x120   : > { %v2232_v29 = vpop.f32.mrf.mxu1  ;;  %v1420_v27 = vpop.f32.mrf.mxu0  ;;  %v1225_v34 = vadd.f32 %v1194_v12, %v1117_v31  ;;  %v995_v30 = vadd.f32 %v2652_v15, %v887_v2  ;;  %v993_v59 = vadd.f32 %v2654_v19, %v885_v60  ;;  %v996_v22 = vadd.f32 %v2656_v6, %v888_v17 }
 0x121   : > { %v1120_v4 = vadd.f32 %v2213_v24, %v992_v44  ;;  %v1118_v1 = vadd.f32 %v1089_v20, %v990_v58  ;;  %v1355_v16 = vadd.f32 %v2232_v29, %v1227_v63  ;;  %v994_v15 = vadd.f32 %v2660_v8, %v886_v3 }
 0x122   : > { %v1322_v54 = vpop.f32.mrf.mxu1  ;;  %v2243_v51 = vpop.f32.mrf.mxu0  ;;  %v1123_v35 = vadd.f32 %v2216_v21, %v995_v30  ;;  %v2780_v7 = vld [vmem:[#allocation5_spill] sm:$0xff] }
 0x123   : > { %v1228_v24 = vadd.f32 %v2223_v23, %v1120_v4  ;;  %v1353_v33 = vadd.f32 %v1322_v54, %v1225_v34  ;;  %v1226_v12 = vadd.f32 %v2664_v18, %v1118_v1  ;;  %v1453_v20 = vadd.f32 %v2242_v28, %v1355_v16  ;;  %v2708_v28 = vld [vmem:[%s2771_s3] ss:$0 sm:$0xff] }
 0x124   : > { %v2233_v56 = vpop.f32.mrf.mxu1  ;;  %v1423_v49 = vpop.f32.mrf.mxu0  ;;  %v1121_v39 = vadd.f32 %v2780_v7, %v993_v59  ;;  %v1231_v19 = vadd.f32 %v2781_v43, %v1123_v35  ;;  %v2782_v21 = vld [vmem:[#allocation7_spill] sm:$0xff]  ;;  %v1122_v18 = vadd.f32 %v2678_v41, %v994_v15  ;;  %v2785_v31 = vld [vmem:[#allocation8_spill] sm:$0xff] }
 0x125   : > { %v1356_v37 = vadd.f32 %v2233_v56, %v1228_v24  ;;  %v1451_v40 = vadd.f32 %v1420_v27, %v1353_v33  ;;  %v1124_v29 = vadd.f32 %v2782_v21, %v996_v22  ;;  %v2783_v27 = vld [vmem:[#allocation4_spill] sm:$0xff] }
 0x126   : > { %v1325_v0 = vpop.f32.mrf.mxu1  ;;  %v2685_v57 = vpop.f32.mrf.mxu0  ;;  %v1229_v47 = vadd.f32 %v2783_v27, %v1121_v39  ;;  %v1230_v61 = vadd.f32 %v2785_v31, %v1122_v18 }
 0x127   : > { %v1354_v23 = vadd.f32 %v1325_v0, %v1226_v12  ;;  %v1454_v8 = vadd.f32 %v2243_v51, %v1356_v37  ;;  %v2784_v51 = vld [vmem:[#allocation6_spill] sm:$0xff] }
 0x128   : > { %v2236_v46 = vpop.f32.mrf.mxu1  ;;  %v2688_v11 = vpop.f32.mrf.mxu0  ;;  %v1232_v44 = vadd.f32 %v2784_v51, %v1124_v29 }
 0x129   : > { %v1359_v56 = vadd.f32 %v2236_v46, %v1231_v19  ;;  %v1452_v41 = vadd.f32 %v1423_v49, %v1354_v23 }
 0x12a   : > { %v1338_v50 = vpop.f32.mrf.mxu1  ;;  %v2692_v32 = vpop.f32.mrf.mxu0 }
 0x12b   : > { %v1357_v2 = vadd.f32 %v1338_v50, %v1229_v47  ;;  %v1457_v49 = vadd.f32 %v2685_v57, %v1359_v56 }
 0x12c   : > { %v2237_v10 = vpop.f32.mrf.mxu1  ;;  %v1439_v36 = vpop.f32.mrf.mxu0 }
 0x12d   : > { %v1360_v60 = vadd.f32 %v2237_v10, %v1232_v44  ;;  %v1455_v24 = vadd.f32 %v2688_v11, %v1357_v2 }
 0x12e   : > { %v1341_v5 = vpop.f32.mrf.mxu1  ;;  %v2262_v38 = vpop.f32.mrf.mxu0 }
 0x12f   : > { %v1358_v34 = vadd.f32 %v1341_v5, %v1230_v61  ;;  %v1458_v5 = vadd.f32 %v2692_v32, %v1360_v60 }
 0x130   : > { %v2252_v9 = vpop.f32.mrf.mxu1  ;;  %v1689_v42 = vpop.f32.mrf.mxu0 }
 0x131   : > { %v1615_v25 = vadd.f32 %v2252_v9, %v1453_v20  ;;  %v1456_v20 = vadd.f32 %v1439_v36, %v1358_v34 }
 0x132   : > { %v1582_v6 = vpop.f32.mrf.mxu1  ;;  %v2263_v54 = vpop.f32.mrf.mxu0 }
 0x133   : > { %v1722_v52 = vadd.f32 %v2262_v38, %v1615_v25  ;;  %v1613_v45 = vadd.f32 %v1582_v6, %v1451_v40 }
 0x134   : > { %v2253_v53 = vpop.f32.mrf.mxu1  ;;  %v1692_v0 = vpop.f32.mrf.mxu0 }
 0x135   : > { %v1737_v13 = vmul.f32 %v2708_v28, %v1722_v52  ;;  %v1720_v55 = vadd.f32 %v1689_v42, %v1613_v45  ;;  %v1616_v62 = vadd.f32 %v2253_v53, %v1454_v8 }
 0x136   : > { %v1585_v58 = vpop.f32.mrf.mxu1  ;;  %v2266_v48 = vpop.f32.mrf.mxu0 }
 0x137   : > { %v1752_v46 = vadd.f32 %v2714_v26, %v1737_v13  ;;  %v1735_v63 = vmul.f32 %v2708_v28, %v1720_v55  ;;  %v1723_v4 = vadd.f32 %v2263_v54, %v1616_v62  ;;  %v1614_v14 = vadd.f32 %v1585_v58, %v1452_v41 }
 0x138   : > { %v2256_v1 = vpop.f32.mrf.mxu1  ;;  %v1705_v3 = vpop.f32.mrf.mxu0 }
 0x139   : > { %v1760_v16 = vmax.f32 %v1752_v46, 0.0  ;;  %v1750_v30 = vadd.f32 %v2714_v26, %v1735_v63  ;;  %v1738_v17 = vmul.f32 %v2708_v28, %v1723_v4  ;;  %v1721_v50 = vadd.f32 %v1692_v0, %v1614_v14 }
 0x13a   : > { %v1619_v33 = vadd.f32 %v2256_v1, %v1457_v49  ;;  %v1598_v59 = vpop.f32.mrf.mxu1  ;;  %v2267_v22 = vpop.f32.mrf.mxu0 }
 0x13b   : > { %v1768_v35 = vmin.f32 %v1760_v16, 20.0  ;;  %v1758_v12 = vmax.f32 %v1750_v30, 0.0  ;;  %v1753_v57 = vadd.f32 %v2714_v26, %v1738_v17  ;;  %v1736_v10 = vmul.f32 %v2708_v28, %v1721_v50 }
 0x13c   : > { %v1726_v37 = vadd.f32 %v2266_v48, %v1619_v33  ;;  %v1617_v11 = vadd.f32 %v1598_v59, %v1455_v24  ;;  %v2257_v38 = vpop.f32.mrf.mxu1  ;;  %v1708_v6 = vpop.f32.mrf.mxu0 }
 0x13d   : > { %v2097_v15 = vpack.c.bf16 %v1768_v35, %v1768_v35  ;;  %v1766_v7 = vmin.f32 %v1758_v12, 20.0  ;;  %v1761_v39 = vmax.f32 %v1753_v57, 0.0  ;;  %v1751_v9 = vadd.f32 %v2714_v26, %v1736_v10 }
 0x13e   : > { %v1741_v40 = vmul.f32 %v2708_v28, %v1726_v37  ;;  %v1724_v32 = vadd.f32 %v1705_v3, %v1617_v11  ;;  %v1620_v36 = vadd.f32 %v2257_v38, %v1458_v5  ;;  %v1601_v23 = vpop.f32.mrf.mxu1 }
 0x13f   : > { %1809 = vst.msk [vmem:[%s2732_s12 + $0x8] sm:$0xf] %vm1806_vm9, %v2097_v15  ;;  %v2095_v25 = vpack.c.bf16 %v1766_v7, %v1766_v7  ;;  %v1769_v42 = vmin.f32 %v1761_v39, 20.0  ;;  %v1759_v43 = vmax.f32 %v1751_v9, 0.0  ;;  %v1618_v19 = vadd.f32 %v1601_v23, %v1456_v20 }
 0x140   : > { %v1756_v21 = vadd.f32 %v2714_v26, %v1741_v40  ;;  %v1739_v29 = vmul.f32 %v2708_v28, %v1724_v32  ;;  %v1727_v18 = vadd.f32 %v2267_v22, %v1620_v36 }
 0x141   : > { %1807 = vst.msk [vmem:[%s2732_s12] sm:$0xf] %vm1806_vm9, %v2095_v25  ;;  %v2098_v8 = vpack.c.bf16 %v1769_v42, %v1769_v42  ;;  %v1767_v52 = vmin.f32 %v1759_v43, 20.0  ;;  %v1725_v45 = vadd.f32 %v1708_v6, %v1618_v19 }
 0x142   : > { %v1764_v54 = vmax.f32 %v1756_v21, 0.0  ;;  %v1754_v27 = vadd.f32 %v2714_v26, %v1739_v29  ;;  %v1742_v47 = vmul.f32 %v2708_v28, %v1727_v18 }
 0x143   : > { %1810 = vst.msk [vmem:[%s2732_s12 + $0xc] sm:$0xf] %vm1806_vm9, %v2098_v8  ;;  %v2096_v56 = vpack.c.bf16 %v1767_v52, %v1767_v52  ;;  %v1740_v53 = vmul.f32 %v2708_v28, %v1725_v45 }
 0x144   : > { %v1772_v41 = vmin.f32 %v1764_v54, 20.0  ;;  %v1762_v13 = vmax.f32 %v1754_v27, 0.0  ;;  %v1757_v55 = vadd.f32 %v2714_v26, %v1742_v47 }
 0x145   : > { %1808 = vst.msk [vmem:[%s2732_s12 + $0x4] sm:$0xf] %vm1806_vm9, %v2096_v56  ;;  %v1755_v62 = vadd.f32 %v2714_v26, %v1740_v53 }
 0x146   : > { %v2101_v0 = vpack.c.bf16 %v1772_v41, %v1772_v41  ;;  %v1770_v51 = vmin.f32 %v1762_v13, 20.0  ;;  %v1765_v44 = vmax.f32 %v1757_v55, 0.0 }
 0x147   : > { %v1763_v31 = vmax.f32 %v1755_v62, 0.0 }
 0x148   : > { %1813 = vst.msk [vmem:[%s2732_s12 + $0x18] sm:$0xf] %vm1806_vm9, %v2101_v0  ;;  %v2099_v61 = vpack.c.bf16 %v1770_v51, %v1770_v51  ;;  %v1773_v2 = vmin.f32 %v1765_v44, 20.0 }
 0x149   : > { %v1771_v58 = vmin.f32 %v1763_v31, 20.0 }
 0x14a   : > { %1811 = vst.msk [vmem:[%s2732_s12 + $0x10] sm:$0xf] %vm1806_vm9, %v2099_v61  ;;  %v2102_v28 = vpack.c.bf16 %v1773_v2, %v1773_v2 }
 0x14b   : > { %v2100_v46 = vpack.c.bf16 %v1771_v58, %v1771_v58 }
 0x14c   : > { %1814 = vst.msk [vmem:[%s2732_s12 + $0x1c] sm:$0xf] %vm1806_vm9, %v2102_v28 }
 0x14d   : > { %1812 = vst.msk [vmem:[%s2732_s12 + $0x14] sm:$0xf] %vm1806_vm9, %v2100_v46 }
 0x14e PF: > { %s15_s20 = sadd.s32 1, %s2344_s20   ;;  %s2786_s18 = smov %s2340_s19 }
 0x14f   : > { %p12_p5 = scmp.ge.s32.totalorder %s15_s20, 4   ;;  %s2787_s19 = smov %s2789_s21 }
 0x151   :  { %14 = sbr.rel (!%p12_p5) target bundleno = 2 (0x2), region = 92 }

</bundles_post_ra>
